<compile_context>
chip_gen: v5e
topology: v5e:2x2
jax: 0.10.0
libtpu: 0.0.40
codegen_flags: <defaults>
</compile_context>

<pallas_src>
import jax
import jax.numpy as jnp
from jax.experimental import pallas as pl
from jax.experimental.pallas import tpu as pltpu


def _mlp_kernel(x_ref, w1_ref, b1_ref, w2_ref, b2_ref, w3_ref, b3_ref, o_ref):
    """Whole forward pass fused; one batch tile per grid step."""

    def lrelu(v):
        return jnp.where(v > 0, v, 0.01 * v)

    # In-kernel cast: HBM side stays narrow f32, MXU sees bf16 operands.
    x = x_ref[...].astype(jnp.bfloat16)                        # (tile_b, k_bins)

    # fc1 + leaky_relu
    h = jnp.dot(x, w1_ref[...], preferred_element_type=jnp.float32) + b1_ref[...]
    h = lrelu(h).astype(jnp.bfloat16)

    # fc2 + leaky_relu (first application)
    h = jnp.dot(h, w2_ref[...], preferred_element_type=jnp.float32) + b2_ref[...]
    h = lrelu(h).astype(jnp.bfloat16)

    # fc2 + leaky_relu (second application — same weights, matching the module)
    h = jnp.dot(h, w2_ref[...], preferred_element_type=jnp.float32) + b2_ref[...]
    h = lrelu(h).astype(jnp.bfloat16)

    # fc3 (no activation), narrow f32 output (masked lane stores, unpadded HBM).
    o_ref[...] = (
        jnp.dot(h, w3_ref[...], preferred_element_type=jnp.float32) + b3_ref[...]
    ).astype(o_ref.dtype)


def _round_up(n, m):
    return ((n + m - 1) // m) * m


def _pad2d(a, rows, cols):
    return jnp.pad(a, ((0, rows - a.shape[0]), (0, cols - a.shape[1])))


def prepare_params(params):
    """One-time weight prep (hoisted out of the per-call path):
    pad hidden dims to 128 lanes (exact: zero pads stay zero through lrelu/dots)
    and cast weights to bf16. Biases stay f32."""
    k_bins, hidden = params["w1"].shape
    last = params["w3"].shape[1]
    h_pad = _round_up(hidden, 128)
    return {
        "w1": _pad2d(params["w1"], k_bins, h_pad).astype(jnp.bfloat16),  # (k, h_pad)
        "b1": _pad2d(params["b1"], 1, h_pad).astype(jnp.float32),
        "w2": _pad2d(params["w2"], h_pad, h_pad).astype(jnp.bfloat16),   # (h_pad, h_pad)
        "b2": _pad2d(params["b2"], 1, h_pad).astype(jnp.float32),
        "w3": _pad2d(params["w3"], h_pad, last).astype(jnp.bfloat16),    # (h_pad, last)
        "b3": _pad2d(params["b3"], 1, last).astype(jnp.float32),
        "dims": (k_bins, hidden, last),
    }


def model1_forward(pk, prepped, *, batch_tile=1024):
    """pk: (B, k_bins) f32. prepped: output of prepare_params()."""
    B, k_bins = pk.shape
    k_b, _hidden, last = prepped["dims"]
    assert k_bins == k_b, "input feature dim mismatch"
    h_pad = prepped["w2"].shape[0]

    w1, b1 = prepped["w1"], prepped["b1"]
    w2, b2 = prepped["w2"], prepped["b2"]
    w3, b3 = prepped["w3"], prepped["b3"]

    # Batch tile: large (pipeline-overhead amortization) but aim for >= 2 grid
    # steps so v7x's two TensorCores both get work; multiple of 8 (f32 sublanes).
    half = _round_up(max(-(-B // 2), 8), 8)
    tile_b = min(batch_tile, half)
    b_pad = _round_up(B, tile_b)
    grid = (b_pad // tile_b,)

    # Only a (cheap) batch pad when tile_b doesn't divide B; no lane pad, no cast.
    if b_pad != B:
        pk = jnp.pad(pk, ((0, b_pad - B), (0, 0)))

    # Weights/biases: constant index_map -> VMEM-resident across the batch grid.
    def resident(shape):
        return pl.BlockSpec(shape, lambda i: (0, 0))

    # Scoped-VMEM budget from actual footprints (double-buffered I/O tiles,
    # resident weights, live activations), with 2x headroom. Kept well under
    # the v7x 64 MiB physical ceiling.
    tile_io_bytes = tile_b * k_bins * 4 + tile_b * last * 4
    weight_bytes = (w1.size + w2.size + w3.size) * 2 + (b1.size + b2.size + b3.size) * 4
    act_bytes = 4 * tile_b * h_pad * 4
    vmem_limit = min(max(2 * (2 * tile_io_bytes + 2 * weight_bytes + act_bytes),
                         16 << 20), 48 << 20)

    flops = int(2 * b_pad * (k_bins * h_pad + 2 * h_pad * h_pad + h_pad * last))
    bytes_accessed = int(
        b_pad * k_bins * 4            # x (f32, unpadded lanes)
        + weight_bytes                # resident weights/biases
        + b_pad * last * 4            # output (f32, unpadded lanes)
    )

    out = pl.pallas_call(
        _mlp_kernel,
        out_shape=jax.ShapeDtypeStruct((b_pad, last), jnp.float32),
        grid=grid,
        in_specs=[
            pl.BlockSpec((tile_b, k_bins), lambda i: (i, 0)),  # x: tiled over batch, narrow
            resident((k_bins, h_pad)),                         # w1
            resident((1, h_pad)),                              # b1
            resident((h_pad, h_pad)),                          # w2
            resident((1, h_pad)),                              # b2
            resident((h_pad, last)),                           # w3
            resident((1, last)),                               # b3
        ],
        out_specs=pl.BlockSpec((tile_b, last), lambda i: (i, 0)),  # unpadded output
        compiler_params=pltpu.CompilerParams(
            dimension_semantics=("parallel",),                 # shard batch across TCs (v7x)
            vmem_limit_bytes=int(vmem_limit),
        ),
        cost_estimate=pl.CostEstimate(
            flops=flops, transcendentals=0, bytes_accessed=bytes_accessed
        ),
    )(pk, w1, b1, w2, b2, w3, b3)

    # Only the batch padding needs slicing off.
    return out[:B]


def init_params(key, k_bins, hidden, last_layer):
    """Deterministic init mirroring Model1.__init__:
       kaiming_normal_ on Linear weights (gain=sqrt(2), fan_in),
       PyTorch-default uniform(-1/sqrt(fan_in), 1/sqrt(fan_in)) biases."""
    ks = jax.random.split(key, 6)

    def kaiming(k, fan_in, fan_out):
        std = jnp.sqrt(2.0 / fan_in)
        # stored already transposed: (in, out)
        return std * jax.random.normal(k, (fan_in, fan_out), jnp.float32)

    def bias(k, fan_in, fan_out):
        bound = 1.0 / jnp.sqrt(fan_in)
        return jax.random.uniform(
            k, (1, fan_out), jnp.float32, minval=-bound, maxval=bound
        )

    return {
        "w1": kaiming(ks[0], k_bins, hidden),
        "b1": bias(ks[1], k_bins, hidden),
        "w2": kaiming(ks[2], hidden, hidden),
        "b2": bias(ks[3], hidden, hidden),
        "w3": kaiming(ks[4], hidden, last_layer),
        "b3": bias(ks[5], hidden, last_layer),
    }


def _reference_bf16(pk, p):
    """Plain-JAX reference with the same bf16-operand / f32-accumulate recipe."""
    lrelu = lambda v: jnp.where(v > 0, v, 0.01 * v)
    bf = lambda a: a.astype(jnp.bfloat16)
    dot = lambda a, b: jnp.dot(bf(a), bf(b), preferred_element_type=jnp.float32)
    h = lrelu(dot(pk, p["w1"]) + p["b1"])
    h = lrelu(dot(h, p["w2"]) + p["b2"])
    h = lrelu(dot(h, p["w2"]) + p["b2"])
    return dot(h, p["w3"]) + p["b3"]


def _reference_f32(pk, p):
    """Full-precision reference of the module's math (loose sanity check)."""
    lrelu = lambda v: jnp.where(v > 0, v, 0.01 * v)
    h = lrelu(pk @ p["w1"] + p["b1"])
    h = lrelu(h @ p["w2"] + p["b2"])
    h = lrelu(h @ p["w2"] + p["b2"])
    return h @ p["w3"] + p["b3"]


if __name__ == "__main__":
    k_bins, hidden, last_layer = 32, 32, 16
    batch = 8

    key = jax.random.PRNGKey(0)
    k_params, k_x = jax.random.split(key)

    params = init_params(k_params, k_bins, hidden, last_layer)
    prepped = prepare_params(params)          # one-time pad/cast, outside per-call path
    pk = jax.random.normal(k_x, (batch, k_bins), jnp.float32)

    out = model1_forward(pk, prepped)
    out = jax.block_until_ready(out)

    assert out.shape == (batch, last_layer)
    # Tight check vs. a reference using the identical bf16-operand recipe.
    ref_bf16 = _reference_bf16(pk, params)
    assert jnp.allclose(out, ref_bf16, atol=1e-2, rtol=1e-2)
    # Loose check vs. the full-f32 module math (bf16 operand rounding drift).
    ref_f32 = _reference_f32(pk, params)
    assert jnp.allclose(out, ref_f32, atol=5e-2, rtol=5e-2)

    print("KERNEL_OK")
</pallas_src>

<mosaic_0001>
module attributes {stable_mosaic.version = 11 : i64} {
  func.func @_mlp_kernel(%arg0: i32, %arg1: memref<8x32xf32, #tpu.memory_space<vmem>>, %arg2: memref<32x128xbf16, #tpu.memory_space<vmem>>, %arg3: memref<1x128xf32, #tpu.memory_space<vmem>>, %arg4: memref<128x128xbf16, #tpu.memory_space<vmem>>, %arg5: memref<1x128xf32, #tpu.memory_space<vmem>>, %arg6: memref<128x16xbf16, #tpu.memory_space<vmem>>, %arg7: memref<1x16xf32, #tpu.memory_space<vmem>>, %arg8: memref<8x16xf32, #tpu.memory_space<vmem>>) attributes {dimension_semantics = [#tpu.dimension_semantics<parallel>], iteration_bounds = array<i64: 1>, scalar_prefetch = 0 : i64, scratch_operands = 0 : i64, tpu.core_type = #tpu.core_type<tc>, window_params = [{transform_indices = @transform_0, window_bounds = array<i64: 8, 32>}, {pipeline_mode = #tpu.pipeline_mode<synchronous>, transform_indices = @transform_1, window_bounds = array<i64: 32, 128>}, {pipeline_mode = #tpu.pipeline_mode<synchronous>, transform_indices = @transform_2, window_bounds = array<i64: 1, 128>}, {pipeline_mode = #tpu.pipeline_mode<synchronous>, transform_indices = @transform_3, window_bounds = array<i64: 128, 128>}, {pipeline_mode = #tpu.pipeline_mode<synchronous>, transform_indices = @transform_4, window_bounds = array<i64: 1, 128>}, {pipeline_mode = #tpu.pipeline_mode<synchronous>, transform_indices = @transform_5, window_bounds = array<i64: 128, 16>}, {pipeline_mode = #tpu.pipeline_mode<synchronous>, transform_indices = @transform_6, window_bounds = array<i64: 1, 16>}, {transform_indices = @transform_7, window_bounds = array<i64: 8, 16>}]} {
    %c0 = arith.constant 0 : index
    %c0_0 = arith.constant 0 : index
    %0 = vector.load %arg1[%c0, %c0_0] : memref<8x32xf32, #tpu.memory_space<vmem>>, vector<8x32xf32>
    %1 = arith.truncf %0 : vector<8x32xf32> to vector<8x32xbf16>
    %c0_1 = arith.constant 0 : index
    %c0_2 = arith.constant 0 : index
    %2 = vector.load %arg2[%c0_1, %c0_2] : memref<32x128xbf16, #tpu.memory_space<vmem>>, vector<32x128xbf16>
    %cst = arith.constant dense<0.000000e+00> : vector<8x128xf32>
    %3 = tpu.matmul %1, %2, %cst {dimension_numbers = #tpu.dot_dimension_numbers<[1], [0], [0], [1], [0, 0, 1, 1], [], []>} : vector<8x32xbf16>, vector<32x128xbf16>, vector<8x128xf32> -> vector<8x128xf32>
    %c0_3 = arith.constant 0 : index
    %c0_4 = arith.constant 0 : index
    %4 = vector.load %arg3[%c0_3, %c0_4] : memref<1x128xf32, #tpu.memory_space<vmem>>, vector<1x128xf32>
    %5 = vector.broadcast %4 : vector<1x128xf32> to vector<8x128xf32>
    %6 = arith.addf %3, %5 : vector<8x128xf32>
    %cst_5 = arith.constant 0.000000e+00 : f32
    %7 = vector.broadcast %cst_5 : f32 to vector<8x128xf32>
    %8 = arith.cmpf ogt, %6, %7 : vector<8x128xf32>
    %cst_6 = arith.constant 0.00999999977 : f32
    %9 = vector.broadcast %cst_6 : f32 to vector<8x128xf32>
    %10 = arith.mulf %9, %6 : vector<8x128xf32>
    %11 = arith.select %8, %6, %10 : vector<8x128xi1>, vector<8x128xf32>
    %12 = arith.truncf %11 : vector<8x128xf32> to vector<8x128xbf16>
    %c0_7 = arith.constant 0 : index
    %c0_8 = arith.constant 0 : index
    %13 = vector.load %arg4[%c0_7, %c0_8] : memref<128x128xbf16, #tpu.memory_space<vmem>>, vector<128x128xbf16>
    %cst_9 = arith.constant dense<0.000000e+00> : vector<8x128xf32>
    %14 = tpu.matmul %12, %13, %cst_9 {dimension_numbers = #tpu.dot_dimension_numbers<[1], [0], [0], [1], [0, 0, 1, 1], [], []>} : vector<8x128xbf16>, vector<128x128xbf16>, vector<8x128xf32> -> vector<8x128xf32>
    %c0_10 = arith.constant 0 : index
    %c0_11 = arith.constant 0 : index
    %15 = vector.load %arg5[%c0_10, %c0_11] : memref<1x128xf32, #tpu.memory_space<vmem>>, vector<1x128xf32>
    %16 = vector.broadcast %15 : vector<1x128xf32> to vector<8x128xf32>
    %17 = arith.addf %14, %16 : vector<8x128xf32>
    %cst_12 = arith.constant 0.000000e+00 : f32
    %18 = vector.broadcast %cst_12 : f32 to vector<8x128xf32>
    %19 = arith.cmpf ogt, %17, %18 : vector<8x128xf32>
    %cst_13 = arith.constant 0.00999999977 : f32
    %20 = vector.broadcast %cst_13 : f32 to vector<8x128xf32>
    %21 = arith.mulf %20, %17 : vector<8x128xf32>
    %22 = arith.select %19, %17, %21 : vector<8x128xi1>, vector<8x128xf32>
    %23 = arith.truncf %22 : vector<8x128xf32> to vector<8x128xbf16>
    %c0_14 = arith.constant 0 : index
    %c0_15 = arith.constant 0 : index
    %24 = vector.load %arg4[%c0_14, %c0_15] : memref<128x128xbf16, #tpu.memory_space<vmem>>, vector<128x128xbf16>
    %cst_16 = arith.constant dense<0.000000e+00> : vector<8x128xf32>
    %25 = tpu.matmul %23, %24, %cst_16 {dimension_numbers = #tpu.dot_dimension_numbers<[1], [0], [0], [1], [0, 0, 1, 1], [], []>} : vector<8x128xbf16>, vector<128x128xbf16>, vector<8x128xf32> -> vector<8x128xf32>
    %c0_17 = arith.constant 0 : index
    %c0_18 = arith.constant 0 : index
    %26 = vector.load %arg5[%c0_17, %c0_18] : memref<1x128xf32, #tpu.memory_space<vmem>>, vector<1x128xf32>
    %27 = vector.broadcast %26 : vector<1x128xf32> to vector<8x128xf32>
    %28 = arith.addf %25, %27 : vector<8x128xf32>
    %cst_19 = arith.constant 0.000000e+00 : f32
    %29 = vector.broadcast %cst_19 : f32 to vector<8x128xf32>
    %30 = arith.cmpf ogt, %28, %29 : vector<8x128xf32>
    %cst_20 = arith.constant 0.00999999977 : f32
    %31 = vector.broadcast %cst_20 : f32 to vector<8x128xf32>
    %32 = arith.mulf %31, %28 : vector<8x128xf32>
    %33 = arith.select %30, %28, %32 : vector<8x128xi1>, vector<8x128xf32>
    %34 = arith.truncf %33 : vector<8x128xf32> to vector<8x128xbf16>
    %c0_21 = arith.constant 0 : index
    %c0_22 = arith.constant 0 : index
    %35 = vector.load %arg6[%c0_21, %c0_22] : memref<128x16xbf16, #tpu.memory_space<vmem>>, vector<128x16xbf16>
    %cst_23 = arith.constant dense<0.000000e+00> : vector<8x16xf32>
    %36 = tpu.matmul %34, %35, %cst_23 {dimension_numbers = #tpu.dot_dimension_numbers<[1], [0], [0], [1], [0, 0, 1, 1], [], []>} : vector<8x128xbf16>, vector<128x16xbf16>, vector<8x16xf32> -> vector<8x16xf32>
    %c0_24 = arith.constant 0 : index
    %c0_25 = arith.constant 0 : index
    %37 = vector.load %arg7[%c0_24, %c0_25] : memref<1x16xf32, #tpu.memory_space<vmem>>, vector<1x16xf32>
    %38 = vector.broadcast %37 : vector<1x16xf32> to vector<8x16xf32>
    %39 = arith.addf %36, %38 : vector<8x16xf32>
    %c0_26 = arith.constant 0 : index
    %c0_27 = arith.constant 0 : index
    %40 = vector.load %arg8[%c0_26, %c0_27] : memref<8x16xf32, #tpu.memory_space<vmem>>, vector<8x16xf32>
    tpu.vector_store %arg8[%c0_26, %c0_27], %39 {strides = array<i32>} : memref<8x16xf32, #tpu.memory_space<vmem>>, vector<8x16xf32>,
    return
  }
  func.func @transform_0(%arg0: i32) -> (i32, i32) {
    %c0_i32 = arith.constant 0 : i32
    %c0_i32_0 = arith.constant 0 : i32
    return %arg0, %c0_i32 : i32, i32
  }
  func.func @transform_1(%arg0: i32) -> (i32, i32) {
    %c0_i32 = arith.constant 0 : i32
    %c0_i32_0 = arith.constant 0 : i32
    %c0_i32_1 = arith.constant 0 : i32
    return %c0_i32, %c0_i32_0 : i32, i32
  }
  func.func @transform_2(%arg0: i32) -> (i32, i32) {
    %c0_i32 = arith.constant 0 : i32
    %c0_i32_0 = arith.constant 0 : i32
    %c0_i32_1 = arith.constant 0 : i32
    return %c0_i32, %c0_i32_0 : i32, i32
  }
  func.func @transform_3(%arg0: i32) -> (i32, i32) {
    %c0_i32 = arith.constant 0 : i32
    %c0_i32_0 = arith.constant 0 : i32
    %c0_i32_1 = arith.constant 0 : i32
    return %c0_i32, %c0_i32_0 : i32, i32
  }
  func.func @transform_4(%arg0: i32) -> (i32, i32) {
    %c0_i32 = arith.constant 0 : i32
    %c0_i32_0 = arith.constant 0 : i32
    %c0_i32_1 = arith.constant 0 : i32
    return %c0_i32, %c0_i32_0 : i32, i32
  }
  func.func @transform_5(%arg0: i32) -> (i32, i32) {
    %c0_i32 = arith.constant 0 : i32
    %c0_i32_0 = arith.constant 0 : i32
    %c0_i32_1 = arith.constant 0 : i32
    return %c0_i32, %c0_i32_0 : i32, i32
  }
  func.func @transform_6(%arg0: i32) -> (i32, i32) {
    %c0_i32 = arith.constant 0 : i32
    %c0_i32_0 = arith.constant 0 : i32
    %c0_i32_1 = arith.constant 0 : i32
    return %c0_i32, %c0_i32_0 : i32, i32
  }
  func.func @transform_7(%arg0: i32) -> (i32, i32) {
    %c0_i32 = arith.constant 0 : i32
    %c0_i32_0 = arith.constant 0 : i32
    return %arg0, %c0_i32 : i32, i32
  }
}

</mosaic_0001>

<bundles_post_ra>
// kernel: tpu_custom_call.1
= control target key start
LH: loop header
LB: loop body
LE: loop exit
PB: predicated region body
PF: predicated region fallthrough
CT: control target
= control target key end

     0   :  { %12 = vsyncpa [#allocation3], 0  ;;  %s549_s0 = inlined_call_operand.vmem [shape: f32[8,32], index: 0, kind: input, shape index: {}]   ;;  %s550_s1 = inlined_call_operand.hbm [shape: bf16[32,128], index: 1, kind: input, shape index: {}]   ;;  %s551_s2 = inlined_call_operand.vmem [shape: f32[1,128], index: 2, kind: input, shape index: {}]   ;;  %s552_s3 = inlined_call_operand.vmem [shape: bf16[128,128], index: 3, kind: input, shape index: {}]   ;;  %s553_s4 = inlined_call_operand.vmem [shape: f32[1,128], index: 4, kind: input, shape index: {}]   ;;  %s554_s5 = inlined_call_operand.vmem [shape: bf16[128,16], index: 5, kind: input, shape index: {}]   ;;  %s555_s6 = inlined_call_operand.vmem [shape: f32[1,16], index: 6, kind: input, shape index: {}]   ;;  %s556_s7 = inlined_call_operand.hbm [shape: f32[8,16], index: 7, kind: output, shape index: {}]  }
   0x1   :  { %13 = vsyncpa [#allocation4], 0  ;;  %s20_s26 = sshll.u32 %s550_s1, 4  ;;  %s439_s27 = smov [#allocation2]   ;;  %s21_s26 = int_to_ptr.hbm [resolvable:$true] %s20_s26 }
   0x2   :  { %s22_s28 = sshll.u32 %s439_s27, 4  ;;  %s440_s29 = smov 64   ;;  %s23_s28 = int_to_ptr.vmem [resolvable:$true] %s22_s28 }
   0x3   :  { %s441_s30 = smov 4  }
   0x4   :  { %28 = dma.hbm_to_vmem [thread:$0]  %s21_s26, 256, %s23_s28, [#allocation3], %s440_s29, %s440_s29, %s441_s30  }
   0x5   :  { %435 = dma.done.wait [#allocation3], 256  }
   0x6   :  { %436 = vsyncadd [#allocation3], 4294967040  ;;  %v363_v0 = vld [vmem:[#allocation2 + $0x8] sm:$0xff]  ;;  %v371_v1 = vld [vmem:[%s552_s3 + $0x38] sm:$0xff]  ;;  %vm66_vm0 = vcmask 261120   ;;  %s442_s18 = smov [#allocation5]  }
   0x7   :  { %76 = vmatpush.bf16.msra.mxu0 %v363_v0  ;;  %v362_v2 = vld [vmem:[#allocation2] sm:$0xff]  ;;  %155 = vmatpush.bf16.msra.mxu1 %v371_v1  ;;  %v370_v4 = vld [vmem:[%s552_s3 + $0x30] sm:$0xff]  ;;  %v369_v6 = vld [vmem:[%s552_s3 + $0x28] sm:$0xff]  ;;  %s277_s19 = sshll.u32 %s442_s18, 4  ;;  %s279_s22 = sshll.u32 %s556_s7, 4  ;;  %vm270_vm4 = vcmask 130048   ;;  %s278_s19 = int_to_ptr.vmem [resolvable:$true] %s277_s19  ;;  %s280_s22 = int_to_ptr.hbm [resolvable:$true] %s279_s22 }
   0x8   :  { %v44_v3 = vld [vmem:[%s549_s0] sm:$0xff]  ;;  %172 = vmatpush.bf16.msra.mxu2 %v371_v1  ;;  %v367_v8 = vld [vmem:[%s552_s3 + $0x18] sm:$0xff]  ;;  %v366_v9 = vld [vmem:[%s552_s3 + $0x10] sm:$0xff] }
   0x9   :  { %v45_v5 = vpack.c.bf16 %v44_v3, %v44_v3  ;;  %v368_v7 = vld [vmem:[%s552_s3 + $0x20] sm:$0xff]  ;;  %v365_v10 = vld [vmem:[%s552_s3 + $0x8] sm:$0xff]  ;;  %v379_v19 = vld [vmem:[%s554_s5 + $0x38] sm:$0xff] }
   0xa   :  { %v364_v11 = vld [vmem:[%s552_s3] sm:$0xff]  ;;  %257 = vmatpush.bf16.msra.mxu3 %v379_v19  ;;  %v378_v20 = vld [vmem:[%s554_s5 + $0x30] sm:$0xff]  ;;  %v377_v21 = vld [vmem:[%s554_s5 + $0x28] sm:$0xff] }
   0xb   :  { %77 = vmatpush.bf16.msra.mxu0 %v362_v2  ;;  %156 = vmatpush.bf16.msra.mxu1 %v370_v4  ;;  %v384_v12 = vld [vmem:[%s551_s2] ss:$0 sm:$0xff]  ;;  %v375_v23 = vld [vmem:[%s554_s5 + $0x18] sm:$0xff]  ;;  %v374_v24 = vld [vmem:[%s554_s5 + $0x10] sm:$0xff] }
   0xc   :  { %173 = vmatpush.bf16.msra.mxu2 %v370_v4  ;;  %v376_v22 = vld [vmem:[%s554_s5 + $0x20] sm:$0xff]  ;;  %v373_v32 = vld [vmem:[%s554_s5 + $0x8] sm:$0xff] }
   0xd   :  { %v385_v25 = vld [vmem:[%s553_s4] ss:$0 sm:$0xff] }
   0xe   :  { %297 = vmatmul.msk.bf16.vlgmr.msra.gmra.mxu0 %vm66_vm0, %v45_v5  ;;  %258 = vmatpush.bf16.msra.mxu3 %v378_v20  ;;  %v372_v33 = vld [vmem:[%s554_s5] sm:$0xff] }
   0xf   :  { %157 = vmatpush.bf16.msra.mxu1 %v369_v6  ;;  %v386_v40 = vld [vmem:[%s555_s6] ss:$0 sm:$0xff] }
  0x10   :  { %174 = vmatpush.bf16.msra.mxu2 %v369_v6 }
  0x12   :  { %259 = vmatpush.bf16.msra.mxu3 %v377_v21 }
  0x13   :  { %158 = vmatpush.bf16.msra.mxu1 %v368_v7 }
  0x14   :  { %175 = vmatpush.bf16.msra.mxu2 %v368_v7 }
  0x16   :  { %260 = vmatpush.bf16.msra.mxu3 %v376_v22 }
  0x17   :  { %159 = vmatpush.bf16.msra.mxu1 %v367_v8 }
  0x18   :  { %176 = vmatpush.bf16.msra.mxu2 %v367_v8 }
  0x1a   :  { %261 = vmatpush.bf16.msra.mxu3 %v375_v23 }
  0x1b   :  { %160 = vmatpush.bf16.msra.mxu1 %v366_v9 }
  0x1c   :  { %177 = vmatpush.bf16.msra.mxu2 %v366_v9 }
  0x1e   :  { %262 = vmatpush.bf16.msra.mxu3 %v374_v24 }
  0x1f   :  { %161 = vmatpush.bf16.msra.mxu1 %v365_v10 }
  0x20   :  { %178 = vmatpush.bf16.msra.mxu2 %v365_v10 }
  0x22   :  { %263 = vmatpush.bf16.msra.mxu3 %v373_v32 }
  0x23   :  { %162 = vmatpush.bf16.msra.mxu1 %v364_v11 }
  0x24   :  { %179 = vmatpush.bf16.msra.mxu2 %v364_v11 }
  0x26   :  { %264 = vmatpush.bf16.msra.mxu3 %v372_v33 }
  0x8b   :  { %v79_v13 = vpop.f32.mrf.mxu0 }
  0x8c   :  { %v80_v14 = vadd.f32 %v384_v12, %v79_v13 }
  0x8e   :  { %v84_v15 = vmul.f32 0.01, %v80_v14  ;;  %vm83_vm1 = vcmp.gt.f32.partialorder %v80_v14, 0.0 }
  0x90   :  { %v85_v16 = vsel %vm83_vm1, %v80_v14, %v84_v15 }
  0x91   :  { %v86_v17 = vpack.c.bf16 %v85_v16, %v85_v16 }
  0x93   :  { %v81_v18 = vpop.f32.mrf.mxu0  ;;  %163 = vmatmul.bf16.vlgmr.msra.gmra.mxu1 %v86_v17 }
 0x110   :  { %v164_v26 = vpop.f32.mrf.mxu1 }
 0x111   :  { %v165_v27 = vadd.f32 %v385_v25, %v164_v26 }
 0x113   :  { %v169_v28 = vmul.f32 0.01, %v165_v27  ;;  %vm168_vm2 = vcmp.gt.f32.partialorder %v165_v27, 0.0 }
 0x115   :  { %v170_v29 = vsel %vm168_vm2, %v165_v27, %v169_v28 }
 0x116   :  { %v171_v30 = vpack.c.bf16 %v170_v29, %v170_v29 }
 0x118   :  { %v166_v31 = vpop.f32.mrf.mxu1  ;;  %180 = vmatmul.bf16.vlgmr.msra.gmra.mxu2 %v171_v30 }
 0x19b   :  { %v181_v34 = vpop.f32.mrf.mxu2 }
 0x19c   :  { %v182_v35 = vadd.f32 %v385_v25, %v181_v34 }
 0x19e   :  { %v186_v36 = vmul.f32 0.01, %v182_v35  ;;  %vm185_vm3 = vcmp.gt.f32.partialorder %v182_v35, 0.0 }
 0x1a0   :  { %v187_v37 = vsel %vm185_vm3, %v182_v35, %v186_v36 }
 0x1a1   :  { %v188_v38 = vpack.c.bf16 %v187_v37, %v187_v37 }
 0x1a3   :  { %v183_v39 = vpop.f32.mrf.mxu2  ;;  %265 = vmatmul.bf16.vlgmr.msra.gmra.mxu3 %v188_v38 }
 0x226   :  { %v266_v41 = vpop.f32.mrf.mxu3 }
 0x227   :  { %v267_v42 = vadd.f32 %v386_v40, %v266_v41 }
 0x229   :  { %271 = vst.msk [vmem:[#allocation5] sm:$0xff] %vm270_vm4, %v267_v42 }
 0x22a   :  { %282 = dma.vmem_to_hbm [thread:$0]  %s278_s19, 128, %s280_s22, [#allocation4]  }
 0x22e   :  { %v268_v43 = vpop.f32.mrf.mxu3 }
 0x22f   :  { %437 = dma.done.wait [#allocation4], 128  }
 0x230   :  { %438 = vsyncadd [#allocation4], 4294967168 }
 0x231   :  { %287 = vsyncpa [#allocation3], 1 }
 0x232   :  { %288 = vsyncpa [#allocation4], 1 }

</bundles_post_ra>
